<compile_context>
chip_gen: v6e
topology: v6e:2x2x1
jax: 0.10.0
libtpu: 0.0.40
codegen_flags: <defaults>
</compile_context>

<pallas_src>
import functools

import jax
import jax.numpy as jnp
from jax.experimental import pallas as pl
from jax.experimental.pallas import tpu as pltpu

LANE = 128                         # lane-dense padded width for hidden dims / W3 columns
MAX_BATCH_TILE = 4096              # large tiles amortize ~0.35 us per-grid-step overhead
VMEM_LIMIT_BYTES = 48 * 1024 * 1024  # explicit budget (v5e default scoped VMEM is 16 MiB)


def _round_up(n, m):
    return ((n + m - 1) // m) * m


def _dqn_kernel(x_ref, w1_ref, b1_ref, w2_ref, b2_ref, w3_ref, b3_ref, o_ref, *, out_size):
    """Fused forward for one batch tile: relu(relu(x@W1+b1)@W2+b2)@W3+b3."""
    x = x_ref[...].astype(jnp.bfloat16)

    h1 = jnp.dot(x, w1_ref[...], preferred_element_type=jnp.float32) + b1_ref[...]
    h1 = jnp.maximum(h1, 0.0)

    h2 = jnp.dot(h1.astype(jnp.bfloat16), w2_ref[...],
                 preferred_element_type=jnp.float32) + b2_ref[...]
    h2 = jnp.maximum(h2, 0.0)

    out = jnp.dot(h2.astype(jnp.bfloat16), w3_ref[...],
                  preferred_element_type=jnp.float32) + b3_ref[...]
    # Store only the real head columns; padded lanes never leave VMEM.
    o_ref[...] = out[:, :out_size].astype(o_ref.dtype)


def prepare_params(params):
    """One-time prep: transpose to (in, out), zero-pad hidden/out dims to 128, cast
    weights to bf16 and biases to f32 row vectors.  Call once, reuse every forward."""
    in_size = params["fc1_w"].shape[1]

    def pad_to(a, shape):
        return jnp.pad(a, [(0, s - d) for d, s in zip(a.shape, shape)])

    w1 = pad_to(params["fc1_w"].T.astype(jnp.float32), (in_size, LANE)).astype(jnp.bfloat16)
    w2 = pad_to(params["fc2_w"].T.astype(jnp.float32), (LANE, LANE)).astype(jnp.bfloat16)
    w3 = pad_to(params["fc3_w"].T.astype(jnp.float32), (LANE, LANE)).astype(jnp.bfloat16)
    b1 = pad_to(params["fc1_b"].reshape(1, -1).astype(jnp.float32), (1, LANE))
    b2 = pad_to(params["fc2_b"].reshape(1, -1).astype(jnp.float32), (1, LANE))
    b3 = pad_to(params["fc3_b"].reshape(1, -1).astype(jnp.float32), (1, LANE))
    return {"w1": w1, "b1": b1, "w2": w2, "b2": b2, "w3": w3, "b3": b3}


@functools.partial(jax.jit, static_argnames=("out_size",))
def dqn_forward(x, prep, out_size):
    """x: (batch, input_size).  prep: output of prepare_params.  Returns (batch, out_size) f32."""
    batch, in_size = x.shape

    # Batch tile: whole batch when tiny; otherwise split into >= 2 grid steps (so the
    # "parallel" batch axis spans both TensorCores on v7x), capped at MAX_BATCH_TILE rows
    # (working set stays far below the 48 MiB VMEM budget even at 4096 rows).
    if batch <= 8:
        tb = batch
    else:
        tb = min(MAX_BATCH_TILE, _round_up(pl.cdiv(batch, 2), 8))
    grid = (pl.cdiv(batch, tb),)

    resident = lambda i: (0, 0)   # constant block -> stays in VMEM across grid steps
    single = pl.Buffered(1)       # resident operands need no second pipeline buffer

    return pl.pallas_call(
        functools.partial(_dqn_kernel, out_size=out_size),
        out_shape=jax.ShapeDtypeStruct((batch, out_size), jnp.float32),
        grid=grid,
        in_specs=[
            pl.BlockSpec((tb, in_size), lambda i: (i, 0)),                  # x (pipelined)
            pl.BlockSpec((in_size, LANE), resident, pipeline_mode=single),  # W1
            pl.BlockSpec((1, LANE), resident, pipeline_mode=single),        # b1
            pl.BlockSpec((LANE, LANE), resident, pipeline_mode=single),     # W2
            pl.BlockSpec((1, LANE), resident, pipeline_mode=single),        # b2
            pl.BlockSpec((LANE, LANE), resident, pipeline_mode=single),     # W3
            pl.BlockSpec((1, LANE), resident, pipeline_mode=single),        # b3
        ],
        # Narrow (tb, out_size) output block: last dim equals the full array dim -> legal,
        # and avoids the padded-128 HBM writeback + wrapper slice kernel.
        out_specs=pl.BlockSpec((tb, out_size), lambda i: (i, 0)),
        compiler_params=pltpu.CompilerParams(
            dimension_semantics=("parallel",),
            vmem_limit_bytes=VMEM_LIMIT_BYTES),
    )(x, prep["w1"], prep["b1"], prep["w2"], prep["b2"], prep["w3"], prep["b3"])


def init_params(key, input_size, output_size, hidden=64):
    """Deterministic init mimicking nn.Linear default (uniform(+-1/sqrt(fan_in)))."""
    keys = jax.random.split(key, 6)

    def linear(kw, kb, fan_in, fan_out):
        bound = 1.0 / jnp.sqrt(float(fan_in))
        w = jax.random.uniform(kw, (fan_out, fan_in), jnp.float32, -bound, bound)
        b = jax.random.uniform(kb, (fan_out,), jnp.float32, -bound, bound)
        return w, b

    fc1_w, fc1_b = linear(keys[0], keys[1], input_size, hidden)
    fc2_w, fc2_b = linear(keys[2], keys[3], hidden, hidden)
    fc3_w, fc3_b = linear(keys[4], keys[5], hidden, output_size)
    return {
        "fc1_w": fc1_w, "fc1_b": fc1_b,
        "fc2_w": fc2_w, "fc2_b": fc2_b,
        "fc3_w": fc3_w, "fc3_b": fc3_b,
    }


def reference_forward_f32(x, p):
    """Exact PyTorch-semantics f32 reference."""
    h1 = jnp.maximum(x @ p["fc1_w"].T + p["fc1_b"], 0.0)
    h2 = jnp.maximum(h1 @ p["fc2_w"].T + p["fc2_b"], 0.0)
    return h2 @ p["fc3_w"].T + p["fc3_b"]


def reference_forward_bf16(x, p):
    """Same math as the kernel: bf16 matmul inputs, f32 accumulation, f32 bias/ReLU."""
    def lin(h, w, b):
        return jnp.dot(h.astype(jnp.bfloat16), w.T.astype(jnp.bfloat16),
                       preferred_element_type=jnp.float32) + b
    h1 = jnp.maximum(lin(x, p["fc1_w"], p["fc1_b"]), 0.0)
    h2 = jnp.maximum(lin(h1, p["fc2_w"], p["fc2_b"]), 0.0)
    return lin(h2, p["fc3_w"], p["fc3_b"])


if __name__ == "__main__":
    INPUT_SIZE = 8     # state dimension
    OUTPUT_SIZE = 4    # number of actions

    key = jax.random.PRNGKey(0)
    k_x1, k_x2, k_x3, k_p = jax.random.split(key, 4)
    params = init_params(k_p, INPUT_SIZE, OUTPUT_SIZE)
    prep = prepare_params(params)          # one-time: transpose + pad + bf16 cast

    # Small "inference" batch (single grid step) ...
    x_small = jax.random.normal(k_x1, (2, INPUT_SIZE), dtype=jnp.float32)
    out_small = jax.block_until_ready(dqn_forward(x_small, prep, OUTPUT_SIZE))
    assert out_small.shape == (2, OUTPUT_SIZE), out_small.shape

    # ... a ragged batch (grid of 2 tiles of 8 rows, last tile partial) ...
    x_odd = jax.random.normal(k_x3, (12, INPUT_SIZE), dtype=jnp.float32)
    out_odd = jax.block_until_ready(dqn_forward(x_odd, prep, OUTPUT_SIZE))
    assert out_odd.shape == (12, OUTPUT_SIZE), out_odd.shape

    # ... and a replay-buffer-sized batch exercising the 2-step parallel batch grid.
    x_big = jax.random.normal(k_x2, (1024, INPUT_SIZE), dtype=jnp.float32)
    out_big = jax.block_until_ready(dqn_forward(x_big, prep, OUTPUT_SIZE))
    assert out_big.shape == (1024, OUTPUT_SIZE), out_big.shape

    for x, out in ((x_small, out_small), (x_odd, out_odd), (x_big, out_big)):
        ref_bf16 = reference_forward_bf16(x, params)   # matches kernel numerics
        ref_f32 = reference_forward_f32(x, params)     # PyTorch-exact semantics
        assert jnp.allclose(out, ref_bf16, atol=1e-2, rtol=1e-2), \
            float(jnp.max(jnp.abs(out - ref_bf16)))
        assert jnp.allclose(out, ref_f32, atol=1e-1, rtol=1e-1), \
            float(jnp.max(jnp.abs(out - ref_f32)))

    print("KERNEL_OK")
</pallas_src>

<mosaic_0001>
module attributes {stable_mosaic.version = 11 : i64} {
  func.func @_dqn_kernel(%arg0: i32, %arg1: memref<2x8xf32, #tpu.memory_space<vmem>>, %arg2: memref<8x128xbf16, #tpu.memory_space<vmem>>, %arg3: memref<1x128xf32, #tpu.memory_space<vmem>>, %arg4: memref<128x128xbf16, #tpu.memory_space<vmem>>, %arg5: memref<1x128xf32, #tpu.memory_space<vmem>>, %arg6: memref<128x128xbf16, #tpu.memory_space<vmem>>, %arg7: memref<1x128xf32, #tpu.memory_space<vmem>>, %arg8: memref<2x4xf32, #tpu.memory_space<vmem>>) attributes {dimension_semantics = [#tpu.dimension_semantics<parallel>], iteration_bounds = array<i64: 1>, scalar_prefetch = 0 : i64, scratch_operands = 0 : i64, tpu.core_type = #tpu.core_type<tc>, window_params = [{transform_indices = @transform_0, window_bounds = array<i64: 2, 8>}, {pipeline_mode = #tpu.pipeline_mode<synchronous>, transform_indices = @transform_1, window_bounds = array<i64: 8, 128>}, {pipeline_mode = #tpu.pipeline_mode<synchronous>, transform_indices = @transform_2, window_bounds = array<i64: 1, 128>}, {pipeline_mode = #tpu.pipeline_mode<synchronous>, transform_indices = @transform_3, window_bounds = array<i64: 128, 128>}, {pipeline_mode = #tpu.pipeline_mode<synchronous>, transform_indices = @transform_4, window_bounds = array<i64: 1, 128>}, {pipeline_mode = #tpu.pipeline_mode<synchronous>, transform_indices = @transform_5, window_bounds = array<i64: 128, 128>}, {pipeline_mode = #tpu.pipeline_mode<synchronous>, transform_indices = @transform_6, window_bounds = array<i64: 1, 128>}, {transform_indices = @transform_7, window_bounds = array<i64: 2, 4>}]} {
    %c0 = arith.constant 0 : index
    %c0_0 = arith.constant 0 : index
    %0 = vector.load %arg1[%c0, %c0_0] : memref<2x8xf32, #tpu.memory_space<vmem>>, vector<2x8xf32>
    %1 = arith.truncf %0 : vector<2x8xf32> to vector<2x8xbf16>
    %c0_1 = arith.constant 0 : index
    %c0_2 = arith.constant 0 : index
    %2 = vector.load %arg2[%c0_1, %c0_2] : memref<8x128xbf16, #tpu.memory_space<vmem>>, vector<8x128xbf16>
    %cst = arith.constant dense<0.000000e+00> : vector<2x128xf32>
    %3 = tpu.matmul %1, %2, %cst {dimension_numbers = #tpu.dot_dimension_numbers<[1], [0], [0], [1], [0, 0, 1, 1], [], []>} : vector<2x8xbf16>, vector<8x128xbf16>, vector<2x128xf32> -> vector<2x128xf32>
    %c0_3 = arith.constant 0 : index
    %c0_4 = arith.constant 0 : index
    %4 = vector.load %arg3[%c0_3, %c0_4] : memref<1x128xf32, #tpu.memory_space<vmem>>, vector<1x128xf32>
    %5 = vector.broadcast %4 : vector<1x128xf32> to vector<2x128xf32>
    %6 = arith.addf %3, %5 : vector<2x128xf32>
    %cst_5 = arith.constant 0.000000e+00 : f32
    %7 = vector.broadcast %cst_5 : f32 to vector<2x128xf32>
    %8 = arith.maximumf %6, %7 : vector<2x128xf32>
    %9 = arith.truncf %8 : vector<2x128xf32> to vector<2x128xbf16>
    %c0_6 = arith.constant 0 : index
    %c0_7 = arith.constant 0 : index
    %10 = vector.load %arg4[%c0_6, %c0_7] : memref<128x128xbf16, #tpu.memory_space<vmem>>, vector<128x128xbf16>
    %cst_8 = arith.constant dense<0.000000e+00> : vector<2x128xf32>
    %11 = tpu.matmul %9, %10, %cst_8 {dimension_numbers = #tpu.dot_dimension_numbers<[1], [0], [0], [1], [0, 0, 1, 1], [], []>} : vector<2x128xbf16>, vector<128x128xbf16>, vector<2x128xf32> -> vector<2x128xf32>
    %c0_9 = arith.constant 0 : index
    %c0_10 = arith.constant 0 : index
    %12 = vector.load %arg5[%c0_9, %c0_10] : memref<1x128xf32, #tpu.memory_space<vmem>>, vector<1x128xf32>
    %13 = vector.broadcast %12 : vector<1x128xf32> to vector<2x128xf32>
    %14 = arith.addf %11, %13 : vector<2x128xf32>
    %cst_11 = arith.constant 0.000000e+00 : f32
    %15 = vector.broadcast %cst_11 : f32 to vector<2x128xf32>
    %16 = arith.maximumf %14, %15 : vector<2x128xf32>
    %17 = arith.truncf %16 : vector<2x128xf32> to vector<2x128xbf16>
    %c0_12 = arith.constant 0 : index
    %c0_13 = arith.constant 0 : index
    %18 = vector.load %arg6[%c0_12, %c0_13] : memref<128x128xbf16, #tpu.memory_space<vmem>>, vector<128x128xbf16>
    %cst_14 = arith.constant dense<0.000000e+00> : vector<2x128xf32>
    %19 = tpu.matmul %17, %18, %cst_14 {dimension_numbers = #tpu.dot_dimension_numbers<[1], [0], [0], [1], [0, 0, 1, 1], [], []>} : vector<2x128xbf16>, vector<128x128xbf16>, vector<2x128xf32> -> vector<2x128xf32>
    %c0_15 = arith.constant 0 : index
    %c0_16 = arith.constant 0 : index
    %20 = vector.load %arg7[%c0_15, %c0_16] : memref<1x128xf32, #tpu.memory_space<vmem>>, vector<1x128xf32>
    %21 = vector.broadcast %20 : vector<1x128xf32> to vector<2x128xf32>
    %22 = arith.addf %19, %21 : vector<2x128xf32>
    %23 = vector.extract_strided_slice %22 {offsets = [0, 0], sizes = [2, 4], strides = [1, 1]} : vector<2x128xf32> to vector<2x4xf32>
    %c0_17 = arith.constant 0 : index
    %c0_18 = arith.constant 0 : index
    %24 = vector.load %arg8[%c0_17, %c0_18] : memref<2x4xf32, #tpu.memory_space<vmem>>, vector<2x4xf32>
    tpu.vector_store %arg8[%c0_17, %c0_18], %23 {strides = array<i32>} : memref<2x4xf32, #tpu.memory_space<vmem>>, vector<2x4xf32>,
    return
  }
  func.func @transform_0(%arg0: i32) -> (i32, i32) {
    %c0_i32 = arith.constant 0 : i32
    %c0_i32_0 = arith.constant 0 : i32
    return %arg0, %c0_i32 : i32, i32
  }
  func.func @transform_1(%arg0: i32) -> (i32, i32) {
    %c0_i32 = arith.constant 0 : i32
    %c0_i32_0 = arith.constant 0 : i32
    %c0_i32_1 = arith.constant 0 : i32
    return %c0_i32, %c0_i32_0 : i32, i32
  }
  func.func @transform_2(%arg0: i32) -> (i32, i32) {
    %c0_i32 = arith.constant 0 : i32
    %c0_i32_0 = arith.constant 0 : i32
    %c0_i32_1 = arith.constant 0 : i32
    return %c0_i32, %c0_i32_0 : i32, i32
  }
  func.func @transform_3(%arg0: i32) -> (i32, i32) {
    %c0_i32 = arith.constant 0 : i32
    %c0_i32_0 = arith.constant 0 : i32
    %c0_i32_1 = arith.constant 0 : i32
    return %c0_i32, %c0_i32_0 : i32, i32
  }
  func.func @transform_4(%arg0: i32) -> (i32, i32) {
    %c0_i32 = arith.constant 0 : i32
    %c0_i32_0 = arith.constant 0 : i32
    %c0_i32_1 = arith.constant 0 : i32
    return %c0_i32, %c0_i32_0 : i32, i32
  }
  func.func @transform_5(%arg0: i32) -> (i32, i32) {
    %c0_i32 = arith.constant 0 : i32
    %c0_i32_0 = arith.constant 0 : i32
    %c0_i32_1 = arith.constant 0 : i32
    return %c0_i32, %c0_i32_0 : i32, i32
  }
  func.func @transform_6(%arg0: i32) -> (i32, i32) {
    %c0_i32 = arith.constant 0 : i32
    %c0_i32_0 = arith.constant 0 : i32
    %c0_i32_1 = arith.constant 0 : i32
    return %c0_i32, %c0_i32_0 : i32, i32
  }
  func.func @transform_7(%arg0: i32) -> (i32, i32) {
    %c0_i32 = arith.constant 0 : i32
    %c0_i32_0 = arith.constant 0 : i32
    return %arg0, %c0_i32 : i32, i32
  }
}

</mosaic_0001>

<bundles_post_ra>
// kernel: dqn_forward.1
= control target key start
LH: loop header
LB: loop body
LE: loop exit
PB: predicated region body
PF: predicated region fallthrough
CT: control target
= control target key end

     0   :  { %12 = vsyncpa [#allocation3], 0  ;;  %s660_s0 = inlined_call_operand.hbm [shape: f32[2,8], index: 0, kind: input, shape index: {}]   ;;  %s661_s1 = inlined_call_operand.vmem [shape: bf16[8,128], index: 1, kind: input, shape index: {}]   ;;  %s662_s2 = inlined_call_operand.vmem [shape: f32[1,128], index: 2, kind: input, shape index: {}]   ;;  %s663_s3 = inlined_call_operand.hbm [shape: bf16[128,128], index: 3, kind: input, shape index: {}]   ;;  %s664_s4 = inlined_call_operand.vmem [shape: f32[1,128], index: 4, kind: input, shape index: {}]   ;;  %s665_s5 = inlined_call_operand.hbm [shape: bf16[128,128], index: 5, kind: input, shape index: {}]   ;;  %s666_s6 = inlined_call_operand.vmem [shape: f32[1,128], index: 6, kind: input, shape index: {}]   ;;  %s667_s7 = inlined_call_operand.hbm [shape: f32[2,4], index: 7, kind: output, shape index: {}]  }
   0x1   :  { %13 = vsyncpa [#allocation6], 0 }
   0x2   :  { %14 = vsyncpa [#allocation4], 0  ;;  %s565_s24 = smov [#allocation5]  }
   0x3   :  { %s34_s25 = sshll.u32 %s565_s24, 4  ;;  %s35_s25 = int_to_ptr.vmem [resolvable:$true] %s34_s25 }
   0x4   :  { %s487_s26 = scalar_lea.vmem %s35_s25, 1024  ;;  %p492_p1 = scmp.lt.s32.totalorder %s35_s25, %s35_s25 }
   0x5   :  { %p488_p0 = scmp.ne.s32.totalorder %s35_s25, %s487_s26  ;;  %p493_p2 = scmp.lt.s32.totalorder %s487_s26, %s487_s26 }
   0x7   :  { %p494_p3 = por %p493_p2, %p492_p1 }
   0x9   :  { %p495_p4 = pnand %p494_p3, %p488_p0 }
   0xb   :  { %498 = shalt.err (!%p495_p4)
}
   0xc   :  { %s566_s27 = smov 64   ;;  %s567_s28 = smov 4  }
   0xd   :  { %40 = dma.hbm_to_vmem [thread:$0]  %s663_s3, 1024, %s35_s25, [#allocation6], %s566_s27, %s566_s27, %s567_s28  }
   0xe   :  { %s568_s8 = smov [#allocation2]   ;;  %s569_s10 = smov [#allocation7]  }
   0xf   :  { %s21_s9 = sshll.u32 %s568_s8, 4  ;;  %s48_s11 = sshll.u32 %s569_s10, 4  ;;  %s22_s9 = int_to_ptr.vmem [resolvable:$true] %s21_s9  ;;  %s49_s11 = int_to_ptr.vmem [resolvable:$true] %s48_s11 }
  0x10   :  { %s507_s12 = scalar_lea.vmem %s22_s9, 32  ;;  %p512_p6 = scmp.lt.s32.totalorder %s22_s9, %s22_s9 }
  0x11   :  { %p508_p5 = scmp.ne.s32.totalorder %s22_s9, %s507_s12  ;;  %p513_p7 = scmp.lt.s32.totalorder %s507_s12, %s507_s12 }
  0x13   :  { %p514_p8 = por %p513_p7, %p512_p6 }
  0x15   :  { %p515_p9 = pnand %p514_p8, %p508_p5 }
  0x17   :  { %518 = shalt.err (!%p515_p9)
}
  0x18   :  { %24 = dma.hbm_to_vmem [thread:$0]  %s660_s0, 32, %s22_s9, [#allocation3]  }
  0x19   :  { %s527_s15 = scalar_lea.vmem %s49_s11, 1024  ;;  %p532_p11 = scmp.lt.s32.totalorder %s49_s11, %s49_s11 }
  0x1a   :  { %p528_p10 = scmp.ne.s32.totalorder %s49_s11, %s527_s15  ;;  %p533_p12 = scmp.lt.s32.totalorder %s527_s15, %s527_s15 }
  0x1c   :  { %p534_p13 = por %p533_p12, %p532_p11 }
  0x1e   :  { %p535_p0 = pnand %p534_p13, %p528_p10 }
  0x20   :  { %538 = shalt.err (!%p535_p0)
}
  0x21   :  { %54 = dma.hbm_to_vmem [thread:$0]  %s665_s5, 1024, %s49_s11, [#allocation6], %s566_s27, %s566_s27, %s567_s28  }
  0x22   :  { %559 = dma.done.wait [#allocation3], 32  }
  0x23   :  { %560 = vsyncadd [#allocation3], 4294967264 }
  0x24   :  { %561 = dma.done.wait [#allocation6], 2048  }
  0x25   :  { %562 = vsyncadd [#allocation6], 4294965248  ;;  %v570_v0 = vmov 0.0   ;;  %vm571_vm0 = vmmov 0   ;;  %vm81_vm1 = vcmask 1043456   ;;  %v463_v5 = vld [vmem:[#allocation5 + $0x38] sm:$0xff]  }
  0x26   :  { %409 = vmatprep.subr.bf16.mxu0 %v570_v0  ;;  %411 = vmatprep.mubr.msk.bf16.mxu0 %vm571_vm0, %v570_v0  ;;  %v69_v1 = vld [vmem:[%s661_s1] sm:$0xf]  ;;  %v67_v2 = vld [vmem:[#allocation2] sm:$0x3]  ;;  %vm77_vm2 = vcmask 64512   ;;  %v465_v7 = vld [vmem:[#allocation5 + $0x28] sm:$0xff]  }
  0x27   :  { %415 = vmatprep.subr.bf16.mxu1 %v570_v0  ;;  %431 = vmatprep.mubr.msk.bf16.mxu1 %vm571_vm0, %v570_v0  ;;  %v83_v3 = vsel %vm81_vm1, %v69_v1, 0  ;;  %v68_v4 = vpack.c.bf16 %v67_v2, %v67_v2  ;;  %v464_v6 = vld [vmem:[#allocation5 + $0x30] sm:$0xff]   ;;  %v466_v8 = vld [vmem:[#allocation5 + $0x20] sm:$0xff]   ;;  %v467_v9 = vld [vmem:[#allocation5 + $0x18] sm:$0xff]   ;;  %s572_s21 = smov [#allocation8]   ;;  %vm351_vm3 = vcmask 25600  }
  0x28   :  { %410 = vmatpush3.bf16.msra.mxu0 %v83_v3  ;;  %416 = vmatpush3.bf16.msra.mxu1 %v463_v5  ;;  %v468_v10 = vld [vmem:[#allocation5 + $0x10] sm:$0xff]   ;;  %v469_v11 = vld [vmem:[#allocation5 + $0x8] sm:$0xff]   ;;  %v470_v12 = vld [vmem:[#allocation5] sm:$0xff]   ;;  %s359_s22 = sshll.u32 %s572_s21, 4  ;;  %s360_s22 = int_to_ptr.vmem [resolvable:$true] %s359_s22 }
  0x29   :  { %435 = vmatprep.subr.bf16.mxu0 %v570_v0  ;;  %417 = vmatprep.subr.bf16.mxu1 %v570_v0  ;;  %v471_v13 = vld [vmem:[#allocation7 + $0x38] sm:$0xff]   ;;  %v472_v14 = vld [vmem:[#allocation7 + $0x30] sm:$0xff]   ;;  %v473_v15 = vld [vmem:[#allocation7 + $0x28] sm:$0xff]   ;;  %p544_p2 = scmp.lt.s32.totalorder %s360_s22, %s360_s22 }
  0x2a   :  { %v474_v16 = vld [vmem:[#allocation7 + $0x20] sm:$0xff]   ;;  %v475_v17 = vld [vmem:[#allocation7 + $0x18] sm:$0xff]   ;;  %v476_v18 = vld [vmem:[#allocation7 + $0x10] sm:$0xff]  }
  0x2b   :  { %412 = vmatmul.mubr.msk.bf16.vlgmr.msra.gmra.mxu0 %vm77_vm2, %v68_v4  ;;  %v369_v19 = vld [vmem:[%s662_s2] ss:$0 sm:$0xff]  ;;  %v477_v27 = vld [vmem:[#allocation7 + $0x8] sm:$0xff]   ;;  %v478_v28 = vld [vmem:[#allocation7] sm:$0xff]  }
  0x2c   :  { %451 = vmatprep.mubr.msk.bf16.mxu0 %vm571_vm0, %v570_v0  ;;  %418 = vmatpush3.bf16.msra.mxu1 %v464_v6  ;;  %v371_v29 = vld [vmem:[%s664_s4] ss:$0 sm:$0xff]  ;;  %s539_s4 = scalar_lea.vmem %s360_s22, 32 }
  0x2d   :  { %419 = vmatprep.subr.bf16.mxu1 %v570_v0  ;;  %436 = vmatpush3.bf16.msra.mxu0 %v471_v13  ;;  %v380_v37 = vld [vmem:[%s666_s6] ss:$0 sm:$0xff]  ;;  %p540_p1 = scmp.ne.s32.totalorder %s360_s22, %s539_s4  ;;  %p545_p3 = scmp.lt.s32.totalorder %s539_s4, %s539_s4 }
  0x2e   :  { %437 = vmatprep.subr.bf16.mxu0 %v570_v0 }
  0x2f   :  { %p546_p4 = por %p545_p3, %p544_p2 }
  0x30   :  { %420 = vmatpush3.bf16.msra.mxu1 %v465_v7 }
  0x31   :  { %421 = vmatprep.subr.bf16.mxu1 %v570_v0  ;;  %438 = vmatpush3.bf16.msra.mxu0 %v472_v14  ;;  %p547_p5 = pnand %p546_p4, %p540_p1 }
  0x32   :  { %439 = vmatprep.subr.bf16.mxu0 %v570_v0 }
  0x34   :  { %422 = vmatpush3.bf16.msra.mxu1 %v466_v8 }
  0x35   :  { %423 = vmatprep.subr.bf16.mxu1 %v570_v0  ;;  %440 = vmatpush3.bf16.msra.mxu0 %v473_v15 }
  0x36   :  { %441 = vmatprep.subr.bf16.mxu0 %v570_v0 }
  0x38   :  { %424 = vmatpush3.bf16.msra.mxu1 %v467_v9 }
  0x39   :  { %425 = vmatprep.subr.bf16.mxu1 %v570_v0  ;;  %442 = vmatpush3.bf16.msra.mxu0 %v474_v16 }
  0x3a   :  { %443 = vmatprep.subr.bf16.mxu0 %v570_v0 }
  0x3c   :  { %426 = vmatpush3.bf16.msra.mxu1 %v468_v10 }
  0x3d   :  { %427 = vmatprep.subr.bf16.mxu1 %v570_v0  ;;  %444 = vmatpush3.bf16.msra.mxu0 %v475_v17 }
  0x3e   :  { %445 = vmatprep.subr.bf16.mxu0 %v570_v0 }
  0x40   :  { %428 = vmatpush3.bf16.msra.mxu1 %v469_v11 }
  0x41   :  { %429 = vmatprep.subr.bf16.mxu1 %v570_v0  ;;  %446 = vmatpush3.bf16.msra.mxu0 %v476_v18 }
  0x42   :  { %447 = vmatprep.subr.bf16.mxu0 %v570_v0 }
  0x44   :  { %430 = vmatpush3.bf16.msra.mxu1 %v470_v12 }
  0x45   :  { %448 = vmatpush3.bf16.msra.mxu0 %v477_v27 }
  0x46   :  { %449 = vmatprep.subr.bf16.mxu0 %v570_v0 }
  0x49   :  { %450 = vmatpush3.bf16.msra.mxu0 %v478_v28 }
  0xeb   :  { %v119_v20 = vpop.f32.mrf.mxu0 }
  0xec   :  { %v120_v21 = vadd.f32 %v369_v19, %v119_v20 }
  0xed   :  { %v413_v22 = vpop.f32.mrf.mxu0 }
  0xee   :  { %v125_v23 = vmax.f32 %v120_v21, 0.0 }
  0xef   :  { %v122_v24 = vpop.f32.mrf.mxu0 }
  0xf0   :  { %v126_v25 = vpack.c.bf16 %v125_v23, %v125_v23 }
  0xf1   :  { %v414_v26 = vpop.f32.mrf.mxu0 }
  0xf2   :  { %432 = vmatmul.mubr.bf16.vlgmr.msra.gmra.mxu1 %v126_v25 }
 0x1b2   :  { %v232_v30 = vpop.f32.mrf.mxu1 }
 0x1b3   :  { %v233_v31 = vadd.f32 %v371_v29, %v232_v30 }
 0x1b4   :  { %v433_v32 = vpop.f32.mrf.mxu1 }
 0x1b5   :  { %v238_v33 = vmax.f32 %v233_v31, 0.0 }
 0x1b6   :  { %v235_v34 = vpop.f32.mrf.mxu1 }
 0x1b7   :  { %v239_v35 = vpack.c.bf16 %v238_v33, %v238_v33 }
 0x1b8   :  { %v434_v36 = vpop.f32.mrf.mxu1 }
 0x1b9   :  { %452 = vmatmul.mubr.bf16.vlgmr.msra.gmra.mxu0 %v239_v35 }
 0x279   :  { %v345_v38 = vpop.f32.mrf.mxu0 }
 0x27a   :  { %v346_v39 = vadd.f32 %v380_v37, %v345_v38 }
 0x27b   :  { %v453_v40 = vpop.f32.mrf.mxu0 }
 0x27c   :  { %352 = vst.msk [vmem:[#allocation8] sm:$0x3] %vm351_vm3, %v346_v39 }
 0x27d   :  { %v348_v41 = vpop.f32.mrf.mxu0 }
 0x27e   :  { %550 = shalt.err (!%p547_p5)
}
 0x27f   :  { %362 = dma.vmem_to_hbm [thread:$0]  %s360_s22, 32, %s667_s7, [#allocation4]   ;;  %v454_v42 = vpop.f32.mrf.mxu0 }
 0x280   :  { %563 = dma.done.wait [#allocation4], 32  }
 0x281   :  { %564 = vsyncadd [#allocation4], 4294967264 }
 0x282   :  { %366 = vsyncpa [#allocation3], 1 }
 0x283   :  { %367 = vsyncpa [#allocation6], 1 }
 0x284   :  { %368 = vsyncpa [#allocation4], 1 }

</bundles_post_ra>
